<compile_context>
chip_gen: v7x
topology: tpu7x:2x2x1
jax: 0.10.0
libtpu: 0.0.40
codegen_flags: <defaults>
</compile_context>

<pallas_src>
import numpy as np
import jax
import jax.numpy as jnp
from jax.experimental import pallas as pl
from jax.experimental.pallas import tpu as pltpu

# ---- AccSpec config (matches the module's __init__ defaults) ----------------
SAMPLE_RATE = 500
N_FFT = 80
WIN_MS = 80
HOP_MS = 20
WIN_LEN = int(round(SAMPLE_RATE * WIN_MS / 1000))   # 40 samples
HOP_LEN = int(round(SAMPLE_RATE * HOP_MS / 1000))   # 10 samples
N_FREQ = N_FFT // 2 + 1                             # 41 onesided bins
FREQ_SLICE_START = 10                               # forward() returns mag[:, :, 10:]
N_OUT = N_FREQ - FREQ_SLICE_START                   # 31 output bins
CHUNKS_PER_FRAME = N_FFT // HOP_LEN                 # 8 hop-chunks per 80-sample frame
LANE_HALF = 64                                      # cos -> lanes [0,64), sin -> [64,128)
MAX_TILE_F = 2048                                   # frames per grid step (multiple of 8)


def _round_up(x, m):
    return -(-x // m) * m


def _window_full():
    """Hamming(periodic, 40) window, center-padded to n_fft=80 (torch.stft)."""
    n = np.arange(WIN_LEN)
    w = 0.54 - 0.46 * np.cos(2.0 * np.pi * n / WIN_LEN)
    w_full = np.zeros(N_FFT, dtype=np.float64)
    lpad = (N_FFT - WIN_LEN) // 2
    w_full[lpad:lpad + WIN_LEN] = w
    return w_full


def _packed_basis():
    """Windowed real-DFT basis for bins 10..40, lane-packed cos|sin -> (80, 128)."""
    w_full = _window_full()
    nn = np.arange(N_FFT)[:, None]
    kk = np.arange(FREQ_SLICE_START, N_FREQ)[None, :]          # 31 kept bins
    ang = 2.0 * np.pi * nn * kk / N_FFT
    cos_b = w_full[:, None] * np.cos(ang)                      # [80, 31]
    sin_b = -w_full[:, None] * np.sin(ang)                     # [80, 31]
    basis = np.zeros((N_FFT, 2 * LANE_HALF), dtype=np.float32)
    basis[:, :N_OUT] = cos_b                                   # Re in lanes 0..30
    basis[:, LANE_HALF:LANE_HALF + N_OUT] = sin_b              # Im in lanes 64..94
    return jnp.asarray(basis)


def _accspec_kernel(frames_ref, basis_ref, out_ref):
    """frames_ref: (tile_f, 80) f32  -- windowed-frame samples for this tile.
       basis_ref:  (80, 128)   f32  -- lane-packed cos|sin windowed DFT basis.
       out_ref:    (tile_f, 31) f32 -- |X|^2 for bins 10..40."""
    # One fused MXU matmul: lanes [0,64) carry Re, lanes [64,128) carry Im.
    prod = jnp.dot(frames_ref[...], basis_ref[...],
                   preferred_element_type=jnp.float32)         # (tile_f, 128)
    p2 = prod * prod
    # re^2 + im^2 via a lane rotation by 64 (XLU slot, free alongside the VPU)
    # instead of two half-vreg lane slices.
    power = p2 + pltpu.roll(p2, shift=LANE_HALF, axis=1)
    out_ref[...] = power[:, :N_OUT]


def acc_spec(wav, max_tile_f=MAX_TILE_F):
    """wav: (B, T) float32  ->  (B, 1 + T // hop, N_FREQ - 10) float32."""
    B, T = wav.shape
    n_frames = T // HOP_LEN + 1

    # Balanced frame tiles (multiple of 8).  Force >=2 grid steps when the
    # batch alone cannot occupy both v7x TensorCores.
    n_tiles = -(-n_frames // max_tile_f)
    if B * n_tiles < 2 and n_frames > 8:
        n_tiles = 2
    tile_f = _round_up(-(-n_frames // n_tiles), 8)
    n_tiles = -(-n_frames // tile_f)
    npad = n_tiles * tile_f                                    # padded frame count

    # center=True, pad_mode="constant": 40 zeros each side; extend the right
    # padding so every padded frame (including the garbage frames of the last
    # tile) reads in-bounds zeros.
    pad_left = N_FFT // 2
    n_chunks = npad + CHUNKS_PER_FRAME
    total = n_chunks * HOP_LEN
    x = jnp.pad(wav, ((0, 0), (pad_left, total - T - pad_left)))
    x_chunks = x.reshape(B, n_chunks, HOP_LEN)                 # (B, n_chunks, 10)

    # Wrapper-side framing (hoisted out of the kernel): frame f is hop-chunks
    # [f, f+8) -> padded samples [f*10, f*10+80).  Eight shifted slices + one
    # concat in XLA; the kernel then sees contiguous lane-dense (tile_f, 80)
    # blocks and does a single matmul per tile.
    frames = jnp.concatenate(
        [x_chunks[:, j:j + npad, :] for j in range(CHUNKS_PER_FRAME)],
        axis=-1)                                               # (B, npad, 80)

    basis = _packed_basis()                                    # (80, 128) f32

    flops = 2 * B * npad * N_FFT * (2 * LANE_HALF)
    bytes_accessed = (frames.size + basis.size + B * n_frames * N_OUT) * 4

    mag = pl.pallas_call(
        _accspec_kernel,
        out_shape=jax.ShapeDtypeStruct((B, n_frames, N_OUT), jnp.float32),
        grid=(B, n_tiles),
        in_specs=[
            pl.BlockSpec((None, tile_f, N_FFT), lambda b, j: (b, j, 0)),
            pl.BlockSpec((N_FFT, 2 * LANE_HALF), lambda b, j: (0, 0)),  # resident
        ],
        out_specs=pl.BlockSpec((None, tile_f, N_OUT), lambda b, j: (b, j, 0)),
        compiler_params=pltpu.CompilerParams(
            dimension_semantics=("parallel", "parallel")),
        cost_estimate=pl.CostEstimate(
            flops=flops, transcendentals=0, bytes_accessed=bytes_accessed),
    )(frames, basis)

    # context=False -> ContextWindow skipped; the [10:] slice is already baked
    # into the basis, so `mag` is the final feature tensor.
    return mag


def _reference(wav):
    """Plain-JAX rfft reference of AccSpec.forward (context=False)."""
    B, T = wav.shape
    n_frames = T // HOP_LEN + 1
    pad = N_FFT // 2
    x = jnp.pad(wav, ((0, 0), (pad, pad)))
    idx = jnp.arange(n_frames)[:, None] * HOP_LEN + jnp.arange(N_FFT)[None, :]
    frames = x[:, idx]                                        # (B, F, N_FFT)
    w_full = jnp.asarray(_window_full(), dtype=jnp.float32)
    stft = jnp.fft.rfft(frames * w_full[None, None, :], n=N_FFT, axis=-1)
    mag = jnp.real(stft) ** 2 + jnp.imag(stft) ** 2
    return mag[:, :, FREQ_SLICE_START:]


if __name__ == "__main__":
    root = jax.random.PRNGKey(0)
    k1, k2 = jax.random.split(root)
    acc_spec_j = jax.jit(acc_spec)

    # --- module-scale case: batch=2, 200 samples -> 21 frames x 31 bins ------
    B, T = 2, 200
    wav = jax.random.normal(k1, (B, T), dtype=jnp.float32)
    out = jax.block_until_ready(acc_spec_j(wav))
    assert out.shape == (B, T // HOP_LEN + 1, N_OUT), out.shape
    np.testing.assert_allclose(np.asarray(out), np.asarray(_reference(wav)),
                               rtol=2e-4, atol=2e-4)

    # --- multi-tile case: balanced 2x552 tiles, partial output block ---------
    B2, T2 = 1, 11000                                         # 1101 frames
    wav2 = jax.random.normal(k2, (B2, T2), dtype=jnp.float32)
    out2 = jax.block_until_ready(acc_spec_j(wav2))
    assert out2.shape == (B2, T2 // HOP_LEN + 1, N_OUT), out2.shape
    np.testing.assert_allclose(np.asarray(out2), np.asarray(_reference(wav2)),
                               rtol=2e-4, atol=2e-4)

    print("KERNEL_OK")
</pallas_src>

<mosaic_0001>
module attributes {stable_mosaic.version = 11 : i64} {
  func.func @_accspec_kernel(%arg0: i32, %arg1: i32, %arg2: memref<1x24x80xf32, #tpu.memory_space<vmem>>, %arg3: memref<80x128xf32, #tpu.memory_space<vmem>>, %arg4: memref<1x24x31xf32, #tpu.memory_space<vmem>>) attributes {dimension_semantics = [#tpu.dimension_semantics<parallel>, #tpu.dimension_semantics<parallel>], iteration_bounds = array<i64: 2, 1>, scalar_prefetch = 0 : i64, scratch_operands = 0 : i64, tpu.core_type = #tpu.core_type<tc>, window_params = [{transform_indices = @transform_0, window_bounds = array<i64: 1, 24, 80>}, {pipeline_mode = #tpu.pipeline_mode<synchronous>, transform_indices = @transform_1, window_bounds = array<i64: 80, 128>}, {transform_indices = @transform_2, window_bounds = array<i64: 1, 24, 31>}]} {
    %c0 = arith.constant 0 : index
    %c0_0 = arith.constant 0 : index
    %c0_1 = arith.constant 0 : index
    %0 = vector.load %arg2[%c0, %c0_0, %c0_1] : memref<1x24x80xf32, #tpu.memory_space<vmem>>, vector<1x24x80xf32>
    %1 = vector.shape_cast %0 : vector<1x24x80xf32> to vector<24x80xf32>
    %c0_2 = arith.constant 0 : index
    %c0_3 = arith.constant 0 : index
    %2 = vector.load %arg3[%c0_2, %c0_3] : memref<80x128xf32, #tpu.memory_space<vmem>>, vector<80x128xf32>
    %cst = arith.constant dense<0.000000e+00> : vector<24x128xf32>
    %3 = tpu.matmul %1, %2, %cst {dimension_numbers = #tpu.dot_dimension_numbers<[1], [0], [0], [1], [0, 0, 1, 1], [], []>} : vector<24x80xf32>, vector<80x128xf32>, vector<24x128xf32> -> vector<24x128xf32>
    %4 = arith.mulf %3, %3 : vector<24x128xf32>
    %c64_i32 = arith.constant 64 : i32
    %5 = tpu.dynamic_rotate %4 by %c64_i32 dim 1 : vector<24x128xf32>, i32 -> vector<24x128xf32>
    %6 = arith.addf %4, %5 : vector<24x128xf32>
    %7 = vector.extract_strided_slice %6 {offsets = [0, 0], sizes = [24, 31], strides = [1, 1]} : vector<24x128xf32> to vector<24x31xf32>
    %c0_4 = arith.constant 0 : index
    %c0_5 = arith.constant 0 : index
    %c0_6 = arith.constant 0 : index
    %8 = vector.load %arg4[%c0_4, %c0_5, %c0_6] : memref<1x24x31xf32, #tpu.memory_space<vmem>>, vector<1x24x31xf32>
    %9 = vector.shape_cast %8 : vector<1x24x31xf32> to vector<24x31xf32>
    %10 = vector.shape_cast %7 : vector<24x31xf32> to vector<1x24x31xf32>
    tpu.vector_store %arg4[%c0_4, %c0_5, %c0_6], %10 {strides = array<i32>} : memref<1x24x31xf32, #tpu.memory_space<vmem>>, vector<1x24x31xf32>,
    return
  }
  func.func @transform_0(%arg0: i32, %arg1: i32) -> (i32, i32, i32) {
    %c0_i32 = arith.constant 0 : i32
    %c0_i32_0 = arith.constant 0 : i32
    return %arg0, %arg1, %c0_i32 : i32, i32, i32
  }
  func.func @transform_1(%arg0: i32, %arg1: i32) -> (i32, i32) {
    %c0_i32 = arith.constant 0 : i32
    %c0_i32_0 = arith.constant 0 : i32
    %c0_i32_1 = arith.constant 0 : i32
    return %c0_i32, %c0_i32_0 : i32, i32
  }
  func.func @transform_2(%arg0: i32, %arg1: i32) -> (i32, i32, i32) {
    %c0_i32 = arith.constant 0 : i32
    %c0_i32_0 = arith.constant 0 : i32
    return %arg0, %arg1, %c0_i32 : i32, i32, i32
  }
}

</mosaic_0001>

<bundles_post_ra>
// kernel: acc_spec.1
= control target key start
LH: loop header
LB: loop body
LE: loop exit
PB: predicated region body
PF: predicated region fallthrough
CT: control target
= control target key end

     0   :  { %s540_s9 = smov 0   ;;  %s542_s10 = smov 0   ;;  %s617_s0 = inlined_call_operand.vmem [shape: f32[2,24,80], index: 0, kind: input, shape index: {}]   ;;  %s618_s1 = inlined_call_operand.vmem [shape: f32[80,128], index: 1, kind: input, shape index: {}]   ;;  %s619_s2 = inlined_call_operand.vmem [shape: f32[2,21,31], index: 2, kind: output, shape index: {}]  }
   0x1   :  { %s544_s11 = smov 0  }
   0x2 LB: > { %s24_s12 = sadd.s32 1, %s515_s10  ;;  %p393_p0 = scmp.ge.s32.totalorder %s519_s11, 1  ;;  %s519_s11 = sphi %s544_s11, %s12_s11   ;;  %s515_s10 = sphi %s542_s10, %s621_s10   ;;  %s511_s9 = sphi %s540_s9, %s620_s9  }
   0x3   : > { %p26_p1 = scmp.ge.s32.totalorder %s24_s12, 2  ;;  %p133_p2 = scmp.lt.s32.totalorder %s519_s11, 3 }
   0x5   : > { %s623_s12 = smov (%p26_p1, %s24_s12), 0  ;;  %p134_p3 = pnand %p393_p0, %p133_p2 }
   0x6   : > { %v186_v0 = vld [vmem:[%s618_s1] sm:$0xff] (!%p134_p3)  ;;  %v187_v1 = vld [vmem:[%s618_s1 + $0x8] sm:$0xff] (!%p134_p3)  ;;  %v188_v2 = vld [vmem:[%s618_s1 + $0x10] sm:$0xff] (!%p134_p3)  ;;  %v521_v3 = vmov (!%p134_p3), 0.0|0.0   ;;  %vm522_vm0 = vmmov (!%p134_p3), 0   ;;  %v523_v6 = vmov (!%p134_p3), 0.0  }
   0x7   : > { %137 = sbr.rel (%p134_p3) target bundleno = 364 (0x16c), region = 28  ;;  %443 = vmatprep.subr.bf16.mxu0 (!%p134_p3), %v521_v3  ;;  %458 = vmatprep.subr.bf16.mxu1 (!%p134_p3), %v521_v3  ;;  %v444_v4 = vpack.c.bf16 (!%p134_p3), %v187_v1, %v186_v0  ;;  %v189_v5 = vld [vmem:[%s618_s1 + $0x18] sm:$0xff] (!%p134_p3)  ;;  %v190_v8 = vld [vmem:[%s618_s1 + $0x20] sm:$0xff] (!%p134_p3)  ;;  %v191_v9 = vld [vmem:[%s618_s1 + $0x28] sm:$0xff] (!%p134_p3)  ;;  %p164_p4 = scmp.lt.s32.totalorder (!%p134_p3), %s511_s9, 1  ;;  %vm196_vm1 = vcmask (!%p134_p3), 654336  }
   0x8   : > { %434 = vmatprep.mubr.msk.f32.mxu0 (!%p134_p3), %vm522_vm0, %v523_v6  ;;  %437 = vmatprep.mubr.msk.f32.mxu1 (!%p134_p3), %vm522_vm0, %v523_v6  ;;  %v447_v7 = vpack.c.bf16 (!%p134_p3), %v189_v5, %v188_v2  ;;  %v450_v10 = vpack.c.bf16 (!%p134_p3), %v191_v9, %v190_v8  ;;  %v192_v11 = vld [vmem:[%s618_s1 + $0x30] sm:$0xff] (!%p134_p3)  ;;  %v193_v12 = vld [vmem:[%s618_s1 + $0x38] sm:$0xff] (!%p134_p3)  ;;  %v194_v14 = vld [vmem:[%s618_s1 + $0x40] sm:$0xff] (!%p134_p3)  ;;  %s524_s13 = smov (!%p134_p3), 64   ;;  %vm298_vm2 = vcmask (!%p134_p3), 252928  }
   0x9   : > { %445 = vmatpush3.bf16.msra.mxu0 (!%p134_p3), %v444_v4  ;;  %463 = vmatpush3.bf16.msra.mxu1 (!%p134_p3), %v444_v4  ;;  %v453_v13 = vpack.c.bf16 (!%p134_p3), %v193_v12, %v192_v11  ;;  %v195_v15 = vld [vmem:[%s618_s1 + $0x48] sm:$0xff] (!%p134_p3) }
   0xa   : > { %446 = vmatprep.subr.bf16.mxu0 (!%p134_p3), %v521_v3  ;;  %459 = vmatprep.subr.bf16.mxu1 (!%p134_p3), %v521_v3  ;;  %v456_v16 = vpack.c.bf16 (!%p134_p3), %v195_v15, %v194_v14 }
   0xd   : > { %448 = vmatpush3.bf16.msra.mxu0 (!%p134_p3), %v447_v7  ;;  %464 = vmatpush3.bf16.msra.mxu1 (!%p134_p3), %v447_v7 }
   0xe   : > { %449 = vmatprep.subr.bf16.mxu0 %v521_v3  ;;  %460 = vmatprep.subr.bf16.mxu1 %v521_v3  ;;  %s625_s9 = smov (!%p164_p4, %s511_s9), 1 }
   0xf   : > { %s468_s5 = smul.u32 24, %s625_s9 }
  0x11   : > { %451 = vmatpush3.bf16.msra.mxu0 %v450_v10  ;;  %465 = vmatpush3.bf16.msra.mxu1 %v450_v10  ;;  %s171_s8 = scalar_lea.vmem %s617_s0, %s468_s5  ;;  %s181_s16 = scalar_lea.vmem %s619_s2, %s468_s5 }
  0x12   : > { %452 = vmatprep.subr.bf16.mxu0 %v521_v3  ;;  %461 = vmatprep.subr.bf16.mxu1 %v521_v3  ;;  %v183_v17 = vld [vmem:[%s171_s8] sm:$0xff]  ;;  %v184_v18 = vld [vmem:[%s171_s8 + $0x8] sm:$0xff]  ;;  %v185_v19 = vld [vmem:[%s171_s8 + $0x10] sm:$0xff] }
  0x15   : > { %454 = vmatpush3.bf16.msra.mxu0 %v453_v13  ;;  %466 = vmatpush3.bf16.msra.mxu1 %v453_v13 }
  0x16   : > { %455 = vmatprep.subr.bf16.mxu0 %v521_v3  ;;  %462 = vmatprep.subr.bf16.mxu1 %v521_v3 }
  0x19   : > { %457 = vmatpush3.bf16.msra.mxu0 %v456_v16  ;;  %467 = vmatpush3.bf16.msra.mxu1 %v456_v16 }
  0x1c   : > { %435 = vmatmul.mubr.msk.f32.vlgmr.msra.gmra.mrb[0].mxu0 %vm196_vm1, %v183_v17  ;;  %438 = vmatmul.mubr.msk.f32.vlgmr.msra.gmra.mrb[0].mxu1 %vm196_vm1, %v184_v18 }
  0x1d   : > { %440 = vmatprep.mubr.msk.f32.mxu1 %vm522_vm0, %v523_v6 }
  0x20   : > { %441 = vmatmul.mubr.msk.f32.gmra.mrb[2].mxu1 %vm196_vm1, %v185_v19 }
  0xef   : > { %v272_v20 = vpop.f32.mrb[0].mxu0  ;;  %v277_v21 = vpop.f32.mrb[0].mxu1 }
  0xf0   : > { %v286_v22 = vmul.f32 %v272_v20, %v272_v20  ;;  %v436_v23 = vpop.f32.mrb[1].mxu0  ;;  %v439_v24 = vpop.f32.mrb[1].mxu1  ;;  %v287_v26 = vmul.f32 %v277_v21, %v277_v21 }
  0xf2   : > { %289 = vrot.lane.b32.xlu0 %v286_v22, %s524_s13 }
  0xf3   : > { %v282_v25 = vpop.f32.mrb[2].mxu1 }
  0xf4   : > { %v288_v27 = vmul.f32 %v282_v25, %v282_v25  ;;  %v442_v28 = vpop.f32.mrb[3].mxu1 }
  0xf6   : > { %293 = vrot.lane.b32.xlu1 %v288_v27, %s524_s13  ;;  %291 = vrot.lane.b32.xlu0 %v287_v26, %s524_s13 }
 0x164   : > { %v290_v29 = vpop.permute.xlu0 %289 }
 0x165   : > { %v295_v30 = vadd.f32 %v290_v29, %v286_v22 }
 0x167   : > { %299 = vst.msk [vmem:[%s181_s16] sm:$0xff] %vm298_vm2, %v295_v30 }
 0x168   : > { %v294_v31 = vpop.permute.xlu1 %293  ;;  %v292_v32 = vpop.permute.xlu0 %291 }
 0x169   : > { %v297_v33 = vadd.f32 %v294_v31, %v288_v27  ;;  %v296_v34 = vadd.f32 %v292_v32, %v287_v26 }
 0x16b   : > { %301 = vst.msk [vmem:[%s181_s16 + $0x10] sm:$0xff] %vm298_vm2, %v297_v33  ;;  %300 = vst.msk [vmem:[%s181_s16 + $0x8] sm:$0xff] %vm298_vm2, %v296_v34 }
 0x16c PF: > { %s12_s11 = sadd.s32 1, %s519_s11   ;;  %s620_s9 = smov %s515_s10 }
 0x16d   : > { %p9_p5 = scmp.ge.s32.totalorder %s12_s11, 4   ;;  %s621_s10 = smov %s623_s12 }
 0x16f   :  { %11 = sbr.rel (!%p9_p5) target bundleno = 2 (0x2), region = 58 }

</bundles_post_ra>
